<compile_context>
chip_gen: v6e
topology: v6e:2x2x1
jax: 0.10.0
libtpu: 0.0.40
codegen_flags: <defaults>
</compile_context>

<pallas_src>
import jax
import jax.numpy as jnp
from jax.experimental import pallas as pl
from jax.experimental.pallas import tpu as pltpu

BN_EPS = 1e-5
LEAKY_SLOPE = 0.1


def distance_block2_kernel(x_ref, w1_ref, gamma_ref, beta_ref, w2_ref, b2_ref,
                           out_ref, acc_ref):
    h_idx = pl.program_id(0)

    @pl.when(h_idx == 0)
    def _():
        acc_ref[...] = jnp.zeros_like(acc_ref)

    # ---- add_block: Linear(D, 1024), this H block.  (b1 omitted: cancelled
    #      exactly by the training-mode BN mean subtraction; init sets it to 0.)
    h = jnp.dot(x_ref[...], w1_ref[...],
                preferred_element_type=jnp.float32)              # (N, TH) f32

    # ---- add_block: BatchNorm1d(1024), training mode (batch stats over axis 0,
    #      biased variance, eps=1e-5).  Per-column stats -> exact per H block.
    mean = jnp.mean(h, axis=0, keepdims=True)                    # (1, TH)
    d = h - mean
    var = jnp.mean(d * d, axis=0, keepdims=True)                 # biased var
    scale = gamma_ref[...] * jax.lax.rsqrt(var + BN_EPS)         # gamma folded in
    hn = d * scale + beta_ref[...]

    # ---- add_block: LeakyReLU(0.1)
    hn = jnp.where(hn > 0, hn, LEAKY_SLOPE * hn)

    # ---- distance: Linear(1024, 512) — accumulate this H block's contribution.
    acc_ref[...] += jnp.dot(hn.astype(w2_ref.dtype), w2_ref[...],
                            preferred_element_type=jnp.float32)

    @pl.when(h_idx == pl.num_programs(0) - 1)
    def _():
        out_ref[...] = acc_ref[...] + b2_ref[...]


def distance_block2(x, params, *, block_h=256):
    """x: (N, D).  params = (w1, b1, gamma, beta, w2, b2); w1/w2 stored bf16."""
    w1, b1, gamma, beta, w2, b2 = params
    del b1  # exactly cancelled by training-mode BatchNorm (and zero by init)

    N, D = x.shape
    H = w1.shape[1]          # 1024
    O = w2.shape[1]          # 512
    assert H % block_h == 0
    n_h = H // block_h

    # Activations in bf16: MXU-native alongside bf16 weights, halves x DMA.
    x = x.astype(jnp.bfloat16)

    flops = 2 * N * D * H + 2 * N * H * O
    bytes_accessed = (x.size * 2 + w1.size * 2 + w2.size * 2
                      + (gamma.size + beta.size + b2.size) * 4 + N * O * 4)

    return pl.pallas_call(
        distance_block2_kernel,
        out_shape=jax.ShapeDtypeStruct((N, O), jnp.float32),
        grid_spec=pltpu.PrefetchScalarGridSpec(
            num_scalar_prefetch=0,
            grid=(n_h,),
            in_specs=[
                pl.BlockSpec((N, D), lambda h: (0, 0)),          # x (resident)
                pl.BlockSpec((D, block_h), lambda h: (0, h)),    # W1[:, blk]
                pl.BlockSpec((1, block_h), lambda h: (0, h)),    # gamma[blk]
                pl.BlockSpec((1, block_h), lambda h: (0, h)),    # beta[blk]
                pl.BlockSpec((block_h, O), lambda h: (h, 0)),    # W2[blk, :]
                pl.BlockSpec((1, O), lambda h: (0, 0)),          # b2 (resident)
            ],
            out_specs=pl.BlockSpec((N, O), lambda h: (0, 0)),    # lane-dense 512
            scratch_shapes=[pltpu.VMEM((N, O), jnp.float32)],    # f32 accumulator
        ),
        compiler_params=pltpu.CompilerParams(
            # H axis is a reduction into the shared accumulator/output.
            dimension_semantics=("arbitrary",)),
        cost_estimate=pl.CostEstimate(flops=flops, transcendentals=H,
                                      bytes_accessed=bytes_accessed),
    )(x, w1, gamma, beta, w2, b2)


def init_params(key, input_dim, hidden=1024, out_dim=512):
    k1, k2, k3 = jax.random.split(key, 3)
    # Linear(input_dim, 1024): kaiming_normal_(a=0, mode='fan_out') on a PyTorch
    # (out, in) weight -> std = sqrt(2 / out_features).
    w1 = (jax.random.normal(k1, (input_dim, hidden), jnp.float32)
          * jnp.sqrt(2.0 / hidden)).astype(jnp.bfloat16)
    b1 = jnp.zeros((1, hidden), jnp.float32)                 # kaiming init -> 0.0
    # BatchNorm1d(1024): weight ~ N(1.0, 0.02), bias = 0.
    gamma = 1.0 + 0.02 * jax.random.normal(k2, (1, hidden), jnp.float32)
    beta = jnp.zeros((1, hidden), jnp.float32)
    # Linear(1024, 512): classifier init -> weight ~ N(0, 0.001), bias = 0.
    w2 = (0.001 * jax.random.normal(k3, (hidden, out_dim), jnp.float32)
          ).astype(jnp.bfloat16)
    b2 = jnp.zeros((1, out_dim), jnp.float32)
    return (w1, b1, gamma, beta, w2, b2)


def reference(x, params):
    """Pure-JAX reference with the same bf16 quantization points as the kernel."""
    w1, b1, gamma, beta, w2, b2 = params
    x32 = x.astype(jnp.bfloat16).astype(jnp.float32)
    w1_32 = w1.astype(jnp.float32)
    w2_32 = w2.astype(jnp.float32)
    h = x32 @ w1_32 + b1
    mean = h.mean(axis=0, keepdims=True)
    var = ((h - mean) ** 2).mean(axis=0, keepdims=True)
    hn = (h - mean) * jax.lax.rsqrt(var + BN_EPS) * gamma + beta
    hn = jnp.where(hn > 0, hn, LEAKY_SLOPE * hn)
    hn = hn.astype(jnp.bfloat16).astype(jnp.float32)   # kernel feeds hn as bf16
    return hn @ w2_32 + b2


if __name__ == "__main__":
    key = jax.random.PRNGKey(0)
    kx, kp = jax.random.split(key)

    N, INPUT_DIM = 8, 256            # small batch, feature dim -> x: (8, 256)
    x = jax.random.normal(kx, (N, INPUT_DIM), jnp.float32)
    params = init_params(kp, INPUT_DIM)

    out = jax.block_until_ready(distance_block2(x, params))
    ref = jax.block_until_ready(reference(x, params))

    assert out.shape == (N, 512), out.shape
    max_err = float(jnp.max(jnp.abs(out - ref)))
    assert jnp.allclose(out, ref, atol=5e-4, rtol=5e-3), max_err

    print("KERNEL_OK")
</pallas_src>

<mosaic_0001>
module attributes {stable_mosaic.version = 11 : i64} {
  func.func @distance_block2_kernel(%arg0: i32, %arg1: memref<8x256xbf16, #tpu.memory_space<vmem>>, %arg2: memref<256x256xbf16, #tpu.memory_space<vmem>>, %arg3: memref<1x256xf32, #tpu.memory_space<vmem>>, %arg4: memref<1x256xf32, #tpu.memory_space<vmem>>, %arg5: memref<256x512xbf16, #tpu.memory_space<vmem>>, %arg6: memref<1x512xf32, #tpu.memory_space<vmem>>, %arg7: memref<8x512xf32, #tpu.memory_space<vmem>>, %arg8: memref<8x512xf32, #tpu.memory_space<vmem>>) attributes {dimension_semantics = [#tpu.dimension_semantics<arbitrary>], iteration_bounds = array<i64: 4>, scalar_prefetch = 0 : i64, scratch_operands = 1 : i64, tpu.core_type = #tpu.core_type<tc>, window_params = [{pipeline_mode = #tpu.pipeline_mode<synchronous>, transform_indices = @transform_0, window_bounds = array<i64: 8, 256>}, {transform_indices = @transform_1, window_bounds = array<i64: 256, 256>}, {transform_indices = @transform_2, window_bounds = array<i64: 1, 256>}, {transform_indices = @transform_3, window_bounds = array<i64: 1, 256>}, {transform_indices = @transform_4, window_bounds = array<i64: 256, 512>}, {pipeline_mode = #tpu.pipeline_mode<synchronous>, transform_indices = @transform_5, window_bounds = array<i64: 1, 512>}, {pipeline_mode = #tpu.pipeline_mode<synchronous>, transform_indices = @transform_6, window_bounds = array<i64: 8, 512>}]} {
    %c0_i32 = arith.constant 0 : i32
    %0 = arith.cmpi eq, %arg0, %c0_i32 : i32
    %1 = arith.extui %0 : i1 to i32
    %c0_i32_0 = arith.constant 0 : i32
    %2 = arith.cmpi ne, %1, %c0_i32_0 : i32
    scf.if %2 {
      %cst_23 = arith.constant 0.000000e+00 : f32
      %41 = vector.broadcast %cst_23 : f32 to vector<8x512xf32>
      %c0_24 = arith.constant 0 : index
      %c0_25 = arith.constant 0 : index
      %42 = vector.load %arg8[%c0_24, %c0_25] : memref<8x512xf32, #tpu.memory_space<vmem>>, vector<8x512xf32>
      tpu.vector_store %arg8[%c0_24, %c0_25], %41 {strides = array<i32>} : memref<8x512xf32, #tpu.memory_space<vmem>>, vector<8x512xf32>,
    } else {
    }
    %c0 = arith.constant 0 : index
    %c0_1 = arith.constant 0 : index
    %3 = vector.load %arg1[%c0, %c0_1] : memref<8x256xbf16, #tpu.memory_space<vmem>>, vector<8x256xbf16>
    %c0_2 = arith.constant 0 : index
    %c0_3 = arith.constant 0 : index
    %4 = vector.load %arg2[%c0_2, %c0_3] : memref<256x256xbf16, #tpu.memory_space<vmem>>, vector<256x256xbf16>
    %cst = arith.constant dense<0.000000e+00> : vector<8x256xf32>
    %5 = tpu.matmul %3, %4, %cst {dimension_numbers = #tpu.dot_dimension_numbers<[1], [0], [0], [1], [0, 0, 1, 1], [], []>} : vector<8x256xbf16>, vector<256x256xbf16>, vector<8x256xf32> -> vector<8x256xf32>
    %cst_4 = arith.constant dense<0.000000e+00> : vector<256xf32>
    %6 = vector.multi_reduction <add>, %5, %cst_4 [0] : vector<8x256xf32> to vector<256xf32>
    %7 = vector.shape_cast %6 : vector<256xf32> to vector<1x256xf32>
    %cst_5 = arith.constant 8.000000e+00 : f32
    %8 = vector.broadcast %cst_5 : f32 to vector<1x256xf32>
    %9 = arith.divf %7, %8 : vector<1x256xf32>
    %10 = vector.broadcast %9 : vector<1x256xf32> to vector<8x256xf32>
    %11 = arith.subf %5, %10 : vector<8x256xf32>
    %12 = arith.mulf %11, %11 : vector<8x256xf32>
    %cst_6 = arith.constant dense<0.000000e+00> : vector<256xf32>
    %13 = vector.multi_reduction <add>, %12, %cst_6 [0] : vector<8x256xf32> to vector<256xf32>
    %14 = vector.shape_cast %13 : vector<256xf32> to vector<1x256xf32>
    %cst_7 = arith.constant 8.000000e+00 : f32
    %15 = vector.broadcast %cst_7 : f32 to vector<1x256xf32>
    %16 = arith.divf %14, %15 : vector<1x256xf32>
    %c0_8 = arith.constant 0 : index
    %c0_9 = arith.constant 0 : index
    %17 = vector.load %arg3[%c0_8, %c0_9] : memref<1x256xf32, #tpu.memory_space<vmem>>, vector<1x256xf32>
    %cst_10 = arith.constant 9.99999974E-6 : f32
    %18 = vector.broadcast %cst_10 : f32 to vector<1x256xf32>
    %19 = arith.addf %16, %18 : vector<1x256xf32>
    %20 = math.rsqrt %19 : vector<1x256xf32>
    %21 = arith.mulf %17, %20 : vector<1x256xf32>
    %22 = vector.broadcast %21 : vector<1x256xf32> to vector<8x256xf32>
    %23 = arith.mulf %11, %22 : vector<8x256xf32>
    %c0_11 = arith.constant 0 : index
    %c0_12 = arith.constant 0 : index
    %24 = vector.load %arg4[%c0_11, %c0_12] : memref<1x256xf32, #tpu.memory_space<vmem>>, vector<1x256xf32>
    %25 = vector.broadcast %24 : vector<1x256xf32> to vector<8x256xf32>
    %26 = arith.addf %23, %25 : vector<8x256xf32>
    %cst_13 = arith.constant 0.000000e+00 : f32
    %27 = vector.broadcast %cst_13 : f32 to vector<8x256xf32>
    %28 = arith.cmpf ogt, %26, %27 : vector<8x256xf32>
    %cst_14 = arith.constant 1.000000e-01 : f32
    %29 = vector.broadcast %cst_14 : f32 to vector<8x256xf32>
    %30 = arith.mulf %29, %26 : vector<8x256xf32>
    %31 = arith.select %28, %26, %30 : vector<8x256xi1>, vector<8x256xf32>
    %c0_15 = arith.constant 0 : index
    %c0_16 = arith.constant 0 : index
    %32 = vector.load %arg8[%c0_15, %c0_16] : memref<8x512xf32, #tpu.memory_space<vmem>>, vector<8x512xf32>
    %33 = arith.truncf %31 : vector<8x256xf32> to vector<8x256xbf16>
    %c0_17 = arith.constant 0 : index
    %c0_18 = arith.constant 0 : index
    %34 = vector.load %arg5[%c0_17, %c0_18] : memref<256x512xbf16, #tpu.memory_space<vmem>>, vector<256x512xbf16>
    %cst_19 = arith.constant dense<0.000000e+00> : vector<8x512xf32>
    %35 = tpu.matmul %33, %34, %cst_19 {dimension_numbers = #tpu.dot_dimension_numbers<[1], [0], [0], [1], [0, 0, 1, 1], [], []>} : vector<8x256xbf16>, vector<256x512xbf16>, vector<8x512xf32> -> vector<8x512xf32>
    %36 = arith.addf %32, %35 : vector<8x512xf32>
    %c0_20 = arith.constant 0 : index
    %c0_21 = arith.constant 0 : index
    %37 = vector.load %arg8[%c0_20, %c0_21] : memref<8x512xf32, #tpu.memory_space<vmem>>, vector<8x512xf32>
    tpu.vector_store %arg8[%c0_20, %c0_21], %36 {strides = array<i32>} : memref<8x512xf32, #tpu.memory_space<vmem>>, vector<8x512xf32>,
    %c3_i32 = arith.constant 3 : i32
    %38 = arith.cmpi eq, %arg0, %c3_i32 : i32
    %39 = arith.extui %38 : i1 to i32
    %c0_i32_22 = arith.constant 0 : i32
    %40 = arith.cmpi ne, %39, %c0_i32_22 : i32
    scf.if %40 {
      %c0_23 = arith.constant 0 : index
      %c0_24 = arith.constant 0 : index
      %41 = vector.load %arg8[%c0_23, %c0_24] : memref<8x512xf32, #tpu.memory_space<vmem>>, vector<8x512xf32>
      %c0_25 = arith.constant 0 : index
      %c0_26 = arith.constant 0 : index
      %42 = vector.load %arg6[%c0_25, %c0_26] : memref<1x512xf32, #tpu.memory_space<vmem>>, vector<1x512xf32>
      %43 = vector.broadcast %42 : vector<1x512xf32> to vector<8x512xf32>
      %44 = arith.addf %41, %43 : vector<8x512xf32>
      %c0_27 = arith.constant 0 : index
      %c0_28 = arith.constant 0 : index
      %45 = vector.load %arg7[%c0_27, %c0_28] : memref<8x512xf32, #tpu.memory_space<vmem>>, vector<8x512xf32>
      tpu.vector_store %arg7[%c0_27, %c0_28], %44 {strides = array<i32>} : memref<8x512xf32, #tpu.memory_space<vmem>>, vector<8x512xf32>,
    } else {
    }
    return
  }
  func.func @transform_0(%arg0: i32) -> (i32, i32) {
    %c0_i32 = arith.constant 0 : i32
    %c0_i32_0 = arith.constant 0 : i32
    %c0_i32_1 = arith.constant 0 : i32
    return %c0_i32, %c0_i32_0 : i32, i32
  }
  func.func @transform_1(%arg0: i32) -> (i32, i32) {
    %c0_i32 = arith.constant 0 : i32
    %c0_i32_0 = arith.constant 0 : i32
    return %c0_i32, %arg0 : i32, i32
  }
  func.func @transform_2(%arg0: i32) -> (i32, i32) {
    %c0_i32 = arith.constant 0 : i32
    %c0_i32_0 = arith.constant 0 : i32
    return %c0_i32, %arg0 : i32, i32
  }
  func.func @transform_3(%arg0: i32) -> (i32, i32) {
    %c0_i32 = arith.constant 0 : i32
    %c0_i32_0 = arith.constant 0 : i32
    return %c0_i32, %arg0 : i32, i32
  }
  func.func @transform_4(%arg0: i32) -> (i32, i32) {
    %c0_i32 = arith.constant 0 : i32
    %c0_i32_0 = arith.constant 0 : i32
    return %arg0, %c0_i32 : i32, i32
  }
  func.func @transform_5(%arg0: i32) -> (i32, i32) {
    %c0_i32 = arith.constant 0 : i32
    %c0_i32_0 = arith.constant 0 : i32
    %c0_i32_1 = arith.constant 0 : i32
    return %c0_i32, %c0_i32_0 : i32, i32
  }
  func.func @transform_6(%arg0: i32) -> (i32, i32) {
    %c0_i32 = arith.constant 0 : i32
    %c0_i32_0 = arith.constant 0 : i32
    %c0_i32_1 = arith.constant 0 : i32
    return %c0_i32, %c0_i32_0 : i32, i32
  }
}

</mosaic_0001>

<bundles_post_ra>
// kernel: tpu_custom_call.1
= control target key start
LH: loop header
LB: loop body
LE: loop exit
PB: predicated region body
PF: predicated region fallthrough
CT: control target
= control target key end

     0   :  { %s2363_s0 = inlined_call_operand.hbm [shape: bf16[8,256], index: 0, kind: input, shape index: {}]   ;;  %s2364_s1 = inlined_call_operand.hbm [shape: bf16[256,1024], index: 1, kind: input, shape index: {}]   ;;  %s2365_s2 = inlined_call_operand.hbm [shape: f32[1,1024], index: 2, kind: input, shape index: {}]   ;;  %s2366_s3 = inlined_call_operand.hbm [shape: f32[1,1024], index: 3, kind: input, shape index: {}]   ;;  %s2367_s4 = inlined_call_operand.hbm [shape: bf16[1024,512], index: 4, kind: input, shape index: {}]   ;;  %s2368_s5 = inlined_call_operand.vmem [shape: f32[1,512], index: 5, kind: input, shape index: {}]   ;;  %s2369_s6 = inlined_call_operand.hbm [shape: f32[8,512], index: 6, kind: output, shape index: {}]  }
   0x1   :  { %2375 = sst [smem:[#allocation18_spill]] %s2364_s1 }
   0x2   :  { %11 = vsyncpa [#allocation4], 0 }
   0x3   :  { %12 = vsyncpa [#allocation7], 0 }
   0x4   :  { %14 = vsyncpa [#allocation7 + $0x1], 0 }
   0x5   :  { %15 = vsyncpa [#allocation10], 0 }
   0x6   :  { %17 = vsyncpa [#allocation10 + $0x1], 0 }
   0x7   :  { %18 = vsyncpa [#allocation5], 0  ;;  %s1994_s21 = smov 0   ;;  %s1996_s22 = smov 0  }
   0x8   :  { %s1998_s23 = smov 0   ;;  %s2000_s24 = smov 0  }
   0x9 LB: > { %s2015_s25 = sadd.s32 1, %s1944_s24   ;;  %s52_s26 = sadd.s32 1, %s1940_s23  ;;  %s1944_s24 = sphi %s2000_s24, %s2396_s24   ;;  %s1940_s23 = sphi %s1998_s23, %s2395_s23   ;;  %s1936_s22 = sphi %s1996_s22, %s2394_s22   ;;  %s1932_s21 = sphi %s1994_s21, %s2393_s21  }
   0xa   : > { %s49_s27 = ssub.s32 %s1944_s24, %s2015_s25  ;;  %p59_p0 = scmp.ne.s32.totalorder %s1940_s23, %s1936_s22 }
   0xb   : > { %p50_p1 = scmp.eq.s32.totalorder %s49_s27, 0  ;;  %p60_p2 = scmp.eq.s32.totalorder %s1944_s24, 0 }
   0xc   : > { %p1541_p3 = scmp.lt.s32.totalorder %s1944_s24, 4  ;;  %s2370_s29 = sand.u32 1, %s1944_s24  }
   0xd   : > { %s2025_s28 = scalar_select %p50_p1, %s1940_s23, %s52_s26  }
   0xe   : > { %p61_p4 = por %p60_p2, %p59_p0  ;;  %s2029_s30 = sand.u32 1, %s1940_s23  }
   0xf   : > { %2376 = sst [smem:[#allocation17_spill]] %s2025_s28  ;;  %s1379_s7 = sshll.u32 %s2029_s30, 8 }
  0x10   : > { %s1502_s8 = sshll.u32 %s1944_s24, 7  ;;  %s2377_s1 = sld [smem:[#allocation18_spill]] }
  0x11   : > { %s227_s12 = scalar_lea.vmem [#allocation6], %s1379_s7  ;;  %p2038_p5 = pnand %p1541_p3, %p61_p4 }
  0x12   : > { %s234_s13 = sshll.u32 %s227_s12, 4  ;;  %s1382_s15 = sshll.u32 %s2029_s30, 1  ;;  %s2042_s13 = int_to_ptr.vmem [resolvable:$true] %s234_s13 }
  0x13   : > { %s2047_s16 = scalar_lea.sflag [#allocation7], %s2370_s29  ;;  %p2053_p7 = pneg %p2038_p5 }
  0x16   : > { %s2036_s11 = scalar_lea.hbm %s2377_s1, %s1502_s8  ;;  %s1741_s26 = scalar_lea.hbm %s2377_s1, 16384 }
  0x17   : > { %s1736_s17 = scalar_lea.hbm %s2036_s11, 4096  ;;  %p1742_p10 = scmp.lt.s32.totalorder %s2036_s11, %s2377_s1 }
  0x18   : > { %p1737_p6 = scmp.ne.s32.totalorder %s2036_s11, %s1736_s17  ;;  %p1743_p11 = scmp.lt.s32.totalorder %s1741_s26, %s1736_s17 }
  0x1a   : > { %p1739_p8 = pnand %p2053_p7, %p1737_p6  ;;  %p1744_p12 = por %p1743_p11, %p1742_p10 }
  0x1c   : > { %p1740_p9 = pneg %p1739_p8 }
  0x1e   : > { %p1745_p13 = pnand %p1744_p12, %p1740_p9 }
  0x20   : > { %1748 = shalt.err (!%p1745_p13)
}
  0x21   : > { %s1749_s8 = scalar_lea.vmem %s2042_s13, 4096  ;;  %s1946_s9 = smov [#allocation6]  }
  0x22   : > { %p1750_p0 = scmp.ne.s32.totalorder %s2042_s13, %s1749_s8  ;;  %s1754_s10 = sshll.u32 %s1946_s9, 4  ;;  %s1755_s10 = int_to_ptr.vmem [resolvable:$false] %s1754_s10 }
  0x23   : > { %s1756_s12 = scalar_lea.vmem %s1755_s10, 8192  ;;  %p1757_p3 = scmp.lt.s32.totalorder %s2042_s13, %s1755_s10 }
  0x24   : > { %p1752_p1 = pnand %p1750_p0, %p2053_p7  ;;  %p1758_p4 = scmp.lt.s32.totalorder %s1756_s12, %s1749_s8 }
  0x26   : > { %p1753_p2 = pneg %p1752_p1  ;;  %p1759_p6 = por %p1758_p4, %p1757_p3 }
  0x28   : > { %p1760_p8 = pnand %p1759_p6, %p1753_p2 }
  0x2a   : > { %1763 = shalt.err (!%p1760_p8)
}
  0x2b   : > { %s1947_s17 = smov 512   ;;  %s1948_s19 = smov 128  }
  0x2c   : > { %s1949_s20 = smov 8   ;;  %s1503_s26 = sshll.u32 %s1944_s24, 5 }
  0x2d   : > { %1530 = dma.hbm_to_vmem [thread:$0]  (!%p2038_p5), %s2036_s11, 4096, %s2042_s13, %s2047_s16, %s1947_s17, %s1948_s19, %s1949_s20  }
  0x2e   : > { %s2080_s8 = scalar_lea.hbm %s2365_s2, %s1503_s26  ;;  %s2085_s12 = scalar_lea.hbm %s2366_s3, %s1503_s26 }
  0x2f   : > { %s267_s29 = scalar_lea.vmem [#allocation9], %s1382_s15  ;;  %s2380_s28 = sand.u32 1, %s1944_s24  }
  0x30   : > { %s275_s1 = sshll.u32 %s267_s29, 4  ;;  %s2091_s11 = scalar_lea.sflag [#allocation10], %s2380_s28  ;;  %s276_s1 = int_to_ptr.vmem [resolvable:$true] %s275_s1 }
  0x31   : > { %s1764_s13 = scalar_lea.hbm %s2085_s12, 32  ;;  %s1769_s20 = scalar_lea.hbm %s2366_s3, 128 }
  0x32   : > { %p1765_p9 = scmp.ne.s32.totalorder %s2085_s12, %s1764_s13  ;;  %p1770_p12 = scmp.lt.s32.totalorder %s2085_s12, %s2366_s3 }
  0x33   : > { %p1771_p13 = scmp.lt.s32.totalorder %s1769_s20, %s1764_s13 }
  0x34   : > { %p1767_p10 = pnand %p1765_p9, %p2053_p7 }
  0x35   : > { %p1772_p0 = por %p1771_p13, %p1770_p12 }
  0x36   : > { %p1768_p11 = pneg %p1767_p10 }
  0x38   : > { %p1773_p1 = pnand %p1772_p0, %p1768_p11 }
  0x3a   : > { %1776 = shalt.err (!%p1773_p1)
}
  0x3b   : > { %s1777_s29 = scalar_lea.vmem %s276_s1, 32  ;;  %s1950_s28 = smov [#allocation9]  }
  0x3c   : > { %p1778_p2 = scmp.ne.s32.totalorder %s276_s1, %s1777_s29  ;;  %s1782_s7 = sshll.u32 %s1950_s28, 4  ;;  %s1783_s7 = int_to_ptr.vmem [resolvable:$false] %s1782_s7 }
  0x3d   : > { %s1784_s9 = scalar_lea.vmem %s1783_s7, 64  ;;  %p1785_p6 = scmp.lt.s32.totalorder %s276_s1, %s1783_s7 }
  0x3e   : > { %p1780_p3 = pnand %p1778_p2, %p2053_p7  ;;  %p1786_p8 = scmp.lt.s32.totalorder %s1784_s9, %s1777_s29 }
  0x40   : > { %p1781_p4 = pneg %p1780_p3  ;;  %p1787_p9 = por %p1786_p8, %p1785_p6 }
  0x42   : > { %p1788_p10 = pnand %p1787_p9, %p1781_p4 }
  0x44   : > { %1791 = shalt.err (!%p1788_p10)
}
  0x45   : > { %1536 = dma.hbm_to_vmem [thread:$0]  (!%p2038_p5), %s2085_s12, 32, %s276_s1, %s2091_s11  }
  0x46   : > { %s2111_s10 = sadd.s32 4294967295, %s1944_s24   ;;  %p65_p11 = scmp.ne.s32.totalorder %s1936_s22, %s1932_s21 }
  0x47   : > { %p2371_p12 = scmp.eq.s32.totalorder %s2111_s10, 0  ;;  %p1376_p13 = scmp.ge.s32.totalorder %s1944_s24, 1 }
  0x48   : > { %p196_p0 = scmp.lt.s32.totalorder %s1944_s24, 5  ;;  %s1951_s12 = smov [#allocation3]  }
  0x49   : > { %p2121_p2 = por %p2371_p12, %p65_p11  ;;  %s209_s17 = sshll.u32 %s1951_s12, 4  ;;  %s2129_s17 = int_to_ptr.vmem [resolvable:$true] %s209_s17 }
  0x4a   : > { %p2125_p3 = pnand %p1376_p13, %p196_p0  ;;  %s248_s21 = scalar_lea.vmem [#allocation8], %s1382_s15 }
  0x4b   : > { %s2381_s13 = scalar_select %p2121_p2, 1, 0 }
  0x4c   : > { %s2382_s1 = scalar_select %p2125_p3, 1, 0 }
  0x4d   : > { %s256_s19 = sshll.u32 %s248_s21, 4  ;;  %s1792_s20 = scalar_lea.hbm %s2080_s8, 32  ;;  %s257_s19 = int_to_ptr.vmem [resolvable:$true] %s256_s19 }
  0x4e   : > { %p1793_p6 = scmp.ne.s32.totalorder %s2080_s8, %s1792_s20  ;;  %s1797_s29 = scalar_lea.hbm %s2365_s2, 128 }
  0x4f   : > { %p1798_p10 = scmp.lt.s32.totalorder %s2080_s8, %s2365_s2  ;;  %p1799_p11 = scmp.lt.s32.totalorder %s1797_s29, %s1792_s20 }
  0x50   : > { %p1795_p8 = pnand %p1793_p6, %p2053_p7 }
  0x51   : > { %p1800_p13 = por %p1799_p11, %p1798_p10 }
  0x52   : > { %p1796_p9 = pneg %p1795_p8 }
  0x54   : > { %p1801_p0 = pnand %p1800_p13, %p1796_p9 }
  0x56   : > { %1804 = shalt.err (!%p1801_p0)
}
  0x57   : > { %s1805_s15 = scalar_lea.vmem %s257_s19, 32  ;;  %s1952_s9 = smov [#allocation8]  }
  0x58   : > { %p1806_p1 = scmp.ne.s32.totalorder %s257_s19, %s1805_s15  ;;  %s1810_s12 = sshll.u32 %s1952_s9, 4  ;;  %s1811_s12 = int_to_ptr.vmem [resolvable:$false] %s1810_s12 }
  0x59   : > { %s1812_s21 = scalar_lea.vmem %s1811_s12, 64  ;;  %p1813_p6 = scmp.lt.s32.totalorder %s257_s19, %s1811_s12 }
  0x5a   : > { %p1808_p4 = pnand %p1806_p1, %p2053_p7  ;;  %p1814_p8 = scmp.lt.s32.totalorder %s1812_s21, %s1805_s15 }
  0x5c   : > { %p1809_p12 = pneg %p1808_p4  ;;  %p1815_p2 = por %p1814_p8, %p1813_p6 }
  0x5e   : > { %p1816_p3 = pnand %p1815_p2, %p1809_p12 }
  0x60   : > { %1819 = shalt.err (!%p1816_p3)
}
  0x61   : > { %1533 = dma.hbm_to_vmem [thread:$0]  (!%p2038_p5), %s2080_s8, 32, %s257_s19, %s2047_s16  }
  0x62   : > { %p2383_p1 = scmp.eq.s32.totalorder %s2111_s10, 0  ;;  %p2384_p4 = scmp.ne.s32.totalorder %s2382_s1, 0 }
  0x63   : > { %s1388_s26 = sshll.u32 %s2029_s30, 9  ;;  %s1506_s27 = sshll.u32 %s1944_s24, 13 }
  0x64   : > { %p2385_p9 = pneg %p2384_p4  ;;  %s2166_s7 = scalar_lea.hbm %s2367_s4, %s1506_s27 }
  0x65   : > { %s1831_s15 = scalar_lea.vmem %s2129_s17, 128  ;;  %p1839_p13 = scmp.lt.s32.totalorder %s2129_s17, %s2129_s17 }
  0x66   : > { %p2157_p10 = pnand %p2385_p9, %p2383_p1  ;;  %p1832_p2 = scmp.ne.s32.totalorder %s2129_s17, %s1831_s15 }
  0x67   : > { %p1840_p0 = scmp.lt.s32.totalorder %s1831_s15, %s1831_s15 }
  0x68   : > { %p1822_p12 = pneg %p2157_p10 }
  0x69   : > { %p1841_p6 = por %p1840_p0, %p1839_p13 }
  0x6a   : > { %p1834_p3 = pnand %p1832_p2, %p1822_p12 }
  0x6c   : > { %p1835_p11 = pneg %p1834_p3 }
  0x6e   : > { %p1842_p8 = pnand %p1841_p6, %p1835_p11 }
  0x70   : > { %1845 = shalt.err (!%p1842_p8)
}
  0x71   : > { %1526 = dma.hbm_to_vmem [thread:$0]  (!%p2157_p10), %s2363_s0, 128, %s2129_s17, [#allocation4]  }
  0x72   : > { %s286_s16 = scalar_lea.vmem [#allocation11], %s1388_s26  ;;  %s1846_s19 = scalar_lea.hbm %s2166_s7, 8192 }
  0x73   : > { %s294_s8 = sshll.u32 %s286_s16, 4  ;;  %p1847_p1 = scmp.ne.s32.totalorder %s2166_s7, %s1846_s19  ;;  %s2180_s8 = int_to_ptr.vmem [resolvable:$true] %s294_s8 }
  0x74   : > { %s1851_s21 = scalar_lea.hbm %s2367_s4, 32768  ;;  %p1852_p2 = scmp.lt.s32.totalorder %s2166_s7, %s2367_s4 }
  0x75   : > { %p1849_p9 = pnand %p1847_p1, %p2053_p7  ;;  %p1853_p3 = scmp.lt.s32.totalorder %s1851_s21, %s1846_s19 }
  0x77   : > { %p1850_p12 = pneg %p1849_p9  ;;  %p1854_p11 = por %p1853_p3, %p1852_p2 }
  0x79   : > { %p1855_p10 = pnand %p1854_p11, %p1850_p12 }
  0x7b   : > { %1858 = shalt.err (!%p1855_p10)
}
  0x7c   : > { %s1859_s17 = scalar_lea.vmem %s2180_s8, 8192  ;;  %s1953_s26 = smov [#allocation11]  }
  0x7d   : > { %p1860_p13 = scmp.ne.s32.totalorder %s2180_s8, %s1859_s17  ;;  %s1864_s29 = sshll.u32 %s1953_s26, 4  ;;  %s1865_s29 = int_to_ptr.vmem [resolvable:$false] %s1864_s29 }
  0x7e   : > { %s1866_s28 = scalar_lea.vmem %s1865_s29, 16384  ;;  %p1867_p8 = scmp.lt.s32.totalorder %s2180_s8, %s1865_s29 }
  0x7f   : > { %p1862_p0 = pnand %p1860_p13, %p2053_p7  ;;  %p1868_p1 = scmp.lt.s32.totalorder %s1866_s28, %s1859_s17 }
  0x81   : > { %p1863_p6 = pneg %p1862_p0  ;;  %p1869_p9 = por %p1868_p1, %p1867_p8 }
  0x83   : > { %p1870_p4 = pnand %p1869_p9, %p1863_p6 }
  0x85   : > { %1873 = shalt.err (!%p1870_p4)
}
  0x86   : > { %s1954_s15 = smov 256   ;;  %s1955_s24 = smov 16  }
  0x87   : > { %1539 = dma.hbm_to_vmem [thread:$0]  (!%p2038_p5), %s2166_s7, 8192, %s2180_s8, %s2091_s11, %s1954_s15, %s1954_s15, %s1955_s24  }
  0x88   : > { %p2387_p7 = scmp.ne.s32.totalorder %s2382_s1, 0 }
  0x89   : > { %p2388_p12 = scmp.eq.s32.totalorder (!%p2387_p7), %s2111_s10, 0 }
  0x8a   : > { %306 = sbr.rel (%p2387_p7) target bundleno = 713 (0x2c9), region = 44 }
  0x8f   : > { %1915 = dma.done.wait (%p2388_p12), [#allocation4], 128   ;;  %p2389_p2 = pmov %p2388_p12 }
  0x90   : > { %s312_s18 = sand.u32 1, %s2111_s10   ;;  %s314_s30 = sand.u32 1, %s1936_s22  }
  0x91   : > { %1917 = vsyncadd (%p2389_p2), [#allocation4], 4294967168  ;;  %s1394_s16 = sshll.u32 %s314_s30, 8  ;;  %s313_s19 = scalar_lea.sflag [#allocation7], %s312_s18 }
  0x92   : > { %s2211_s9 = scalar_lea.vmem [#allocation6], %s1394_s16  ;;  %p2390_p4 = scmp.ne.s32.totalorder %s2381_s13, 0 }
  0x94   : > { %1919 = dma.done.wait (%p2390_p4), %s313_s19, 4128  }
  0x95   : > { %1921 = vsyncadd (%p2390_p4), %s313_s19, 4294963168  ;;  %s1395_s14 = sshll.u32 %s314_s30, 1  ;;  %s331_s1 = scalar_lea.sflag [#allocation10], %s312_s18 }
  0x96   : > { %s2217_s11 = scalar_lea.vmem [#allocation8], %s1395_s14  ;;  %s2219_s7 = scalar_lea.vmem [#allocation9], %s1395_s14 }
  0x97   : > { %1923 = dma.done.wait (%p2390_p4), %s331_s1, 8224  }
  0x98   : > { %1925 = vsyncadd (%p2390_p4), %s331_s1, 4294959072  ;;  %s1397_s8 = sshll.u32 %s314_s30, 9  ;;  %p2391_p5 = scmp.ne.s32.totalorder %s2111_s10, 0 }
  0x99   : > { %s2225_s12 = scalar_lea.vmem [#allocation11], %s1397_s8 }
  0x9a   : > { %389 = sbr.rel (%p2391_p5) target bundleno = 162 (0xa2), region = 68 }
  0x9f   : > { %v1956_v0 = vmov 0.0  }
  0xa0   : > { %390 = vst [vmem:[#allocation2 + $0x10] sm:$0xff] %v1956_v0  ;;  %391 = vst [vmem:[#allocation2] sm:$0xff] %v1956_v0 }
  0xa1   : > { %392 = vst [vmem:[#allocation2 + $0x18] sm:$0xff] %v1956_v0  ;;  %393 = vst [vmem:[#allocation2 + $0x8] sm:$0xff] %v1956_v0 }
  0xa2 PF: > { %v1586_v1 = vld [vmem:[%s2211_s9 + $0x74] ss:$8 sps:$4 sm:$0xff]   ;;  %v1588_v2 = vld [vmem:[%s2211_s9 + $0x70] ss:$8 sps:$4 sm:$0xff]   ;;  %v1589_v3 = vld [vmem:[%s2211_s9 + $0x64] ss:$8 sps:$4 sm:$0xff]  }
  0xa3   : > { %594 = vmatprep.subr.bf16.mxu0 %v1586_v1  ;;  %v1591_v4 = vld [vmem:[%s2211_s9 + $0x60] ss:$8 sps:$4 sm:$0xff]   ;;  %v1592_v5 = vld [vmem:[%s2211_s9 + $0x54] ss:$8 sps:$4 sm:$0xff]   ;;  %v1594_v6 = vld [vmem:[%s2211_s9 + $0x50] ss:$8 sps:$4 sm:$0xff]  }
  0xa4   : > { %595 = vmatpush1.bf16.msra.mxu0 %v1588_v2  ;;  %v1595_v7 = vld [vmem:[%s2211_s9 + $0x44] ss:$8 sps:$4 sm:$0xff]   ;;  %v1597_v8 = vld [vmem:[%s2211_s9 + $0x40] ss:$8 sps:$4 sm:$0xff]   ;;  %v1598_v9 = vld [vmem:[%s2211_s9 + $0x34] ss:$8 sps:$4 sm:$0xff]  }
  0xa5   : > { %596 = vmatprep.subr.bf16.mxu0 %v1589_v3  ;;  %v1600_v10 = vld [vmem:[%s2211_s9 + $0x30] ss:$8 sps:$4 sm:$0xff]   ;;  %v1601_v11 = vld [vmem:[%s2211_s9 + $0x24] ss:$8 sps:$4 sm:$0xff]   ;;  %v1603_v12 = vld [vmem:[%s2211_s9 + $0x20] ss:$8 sps:$4 sm:$0xff]  }
  0xa6   : > { %v1604_v13 = vld [vmem:[%s2211_s9 + $0x14] ss:$8 sps:$4 sm:$0xff]   ;;  %v1606_v14 = vld [vmem:[%s2211_s9 + $0x10] ss:$8 sps:$4 sm:$0xff]   ;;  %v1607_v16 = vld [vmem:[%s2211_s9 + $0x4] ss:$8 sps:$4 sm:$0xff]  }
  0xa7   : > { %v394_v15 = vld [vmem:[#allocation3] sm:$0xff]  ;;  %v1609_v18 = vld [vmem:[%s2211_s9] ss:$8 sps:$4 sm:$0xff]   ;;  %v1613_v21 = vld [vmem:[%s2211_s9 + $0xe4] ss:$8 sps:$4 sm:$0xff]   ;;  %p1497_p3 = scmp.ne.s32.totalorder %s2111_s10, 3 }
  0xa8   : > { %597 = vmatpush1.bf16.msra.mxu0 %v1591_v4  ;;  %v1400_v17 = vcombine.high %v394_v15, %v394_v15  ;;  %v1610_v19 = vld [vmem:[%s2211_s9 + $0xf4] ss:$8 sps:$4 sm:$0xff]   ;;  %v1612_v20 = vld [vmem:[%s2211_s9 + $0xf0] ss:$8 sps:$4 sm:$0xff]   ;;  %v1615_v22 = vld [vmem:[%s2211_s9 + $0xe0] ss:$8 sps:$4 sm:$0xff]   ;;  %v1399_v35 = vcombine.low %v394_v15, %v394_v15 }
  0xa9   : > { %598 = vmatprep.subr.bf16.mxu0 %v1592_v5  ;;  %v1616_v23 = vld [vmem:[%s2211_s9 + $0xd4] ss:$8 sps:$4 sm:$0xff]   ;;  %v1618_v24 = vld [vmem:[%s2211_s9 + $0xd0] ss:$8 sps:$4 sm:$0xff]   ;;  %v1619_v25 = vld [vmem:[%s2211_s9 + $0xc4] ss:$8 sps:$4 sm:$0xff]  }
  0xaa   : > { %626 = vmatprep.mubr.bf16.mxu0 %v1400_v17  ;;  %v1621_v26 = vld [vmem:[%s2211_s9 + $0xc0] ss:$8 sps:$4 sm:$0xff]   ;;  %v1622_v27 = vld [vmem:[%s2211_s9 + $0xb4] ss:$8 sps:$4 sm:$0xff]   ;;  %v1624_v28 = vld [vmem:[%s2211_s9 + $0xb0] ss:$8 sps:$4 sm:$0xff]  }
  0xab   : > { %v1625_v29 = vld [vmem:[%s2211_s9 + $0xa4] ss:$8 sps:$4 sm:$0xff]   ;;  %v1627_v30 = vld [vmem:[%s2211_s9 + $0xa0] ss:$8 sps:$4 sm:$0xff]   ;;  %v1628_v31 = vld [vmem:[%s2211_s9 + $0x94] ss:$8 sps:$4 sm:$0xff]  }
  0xac   : > { %599 = vmatpush1.bf16.msra.mxu0 %v1594_v6  ;;  %v1630_v32 = vld [vmem:[%s2211_s9 + $0x90] ss:$8 sps:$4 sm:$0xff]   ;;  %v1631_v33 = vld [vmem:[%s2211_s9 + $0x84] ss:$8 sps:$4 sm:$0xff]   ;;  %v1633_v34 = vld [vmem:[%s2211_s9 + $0x80] ss:$8 sps:$4 sm:$0xff]  }
  0xad   : > { %600 = vmatprep.subr.bf16.mxu0 %v1595_v7  ;;  %v1636_v36 = vld [vmem:[%s2225_s12 + $0xe4] ss:$16 sps:$4 sm:$0xff]   ;;  %v1640_v37 = vld [vmem:[%s2225_s12 + $0xec] ss:$16 sps:$4 sm:$0xff]   ;;  %v1638_v38 = vld [vmem:[%s2225_s12 + $0xe8] ss:$16 sps:$4 sm:$0xff]  }
  0xae   : > { %v1641_v39 = vld [vmem:[%s2225_s12 + $0xe0] ss:$16 sps:$4 sm:$0xff]   ;;  %1115 = vmatprep.subr.bf16.mxu1 %v1636_v36  ;;  %v1642_v40 = vld [vmem:[%s2225_s12 + $0xc4] ss:$16 sps:$4 sm:$0xff]   ;;  %v1646_v41 = vld [vmem:[%s2225_s12 + $0xcc] ss:$16 sps:$4 sm:$0xff]  }
  0xaf   : > { %1116 = vmatpush1.bf16.msra.mxu1 %v1641_v39  ;;  %v1644_v42 = vld [vmem:[%s2225_s12 + $0xc8] ss:$16 sps:$4 sm:$0xff]   ;;  %v1647_v43 = vld [vmem:[%s2225_s12 + $0xc0] ss:$16 sps:$4 sm:$0xff]   ;;  %v1648_v44 = vld [vmem:[%s2225_s12 + $0xa4] ss:$16 sps:$4 sm:$0xff]  }
  0xb0   : > { %601 = vmatpush1.bf16.msra.mxu0 %v1597_v8  ;;  %1117 = vmatprep.subr.bf16.mxu1 %v1642_v40  ;;  %v1652_v45 = vld [vmem:[%s2225_s12 + $0xac] ss:$16 sps:$4 sm:$0xff]   ;;  %v1650_v46 = vld [vmem:[%s2225_s12 + $0xa8] ss:$16 sps:$4 sm:$0xff]   ;;  %v1653_v47 = vld [vmem:[%s2225_s12 + $0xa0] ss:$16 sps:$4 sm:$0xff]  }
  0xb1   : > { %602 = vmatprep.subr.bf16.mxu0 %v1598_v9  ;;  %v1654_v48 = vld [vmem:[%s2225_s12 + $0x84] ss:$16 sps:$4 sm:$0xff]   ;;  %v1658_v49 = vld [vmem:[%s2225_s12 + $0x8c] ss:$16 sps:$4 sm:$0xff]   ;;  %v1656_v50 = vld [vmem:[%s2225_s12 + $0x88] ss:$16 sps:$4 sm:$0xff]  }
  0xb2   : > { %v1659_v51 = vld [vmem:[%s2225_s12 + $0x80] ss:$16 sps:$4 sm:$0xff]   ;;  %v1660_v52 = vld [vmem:[%s2225_s12 + $0x64] ss:$16 sps:$4 sm:$0xff]   ;;  %v1664_v53 = vld [vmem:[%s2225_s12 + $0x6c] ss:$16 sps:$4 sm:$0xff]  }
  0xb3   : > { %1118 = vmatpush1.bf16.msra.mxu1 %v1647_v43  ;;  %v1662_v54 = vld [vmem:[%s2225_s12 + $0x68] ss:$16 sps:$4 sm:$0xff]   ;;  %v1665_v55 = vld [vmem:[%s2225_s12 + $0x60] ss:$16 sps:$4 sm:$0xff]   ;;  %v1666_v56 = vld [vmem:[%s2225_s12 + $0x44] ss:$16 sps:$4 sm:$0xff]  }
  0xb4   : > { %603 = vmatpush1.bf16.msra.mxu0 %v1600_v10  ;;  %1119 = vmatprep.subr.bf16.mxu1 %v1648_v44  ;;  %v1670_v57 = vld [vmem:[%s2225_s12 + $0x4c] ss:$16 sps:$4 sm:$0xff]   ;;  %v1668_v58 = vld [vmem:[%s2225_s12 + $0x48] ss:$16 sps:$4 sm:$0xff]   ;;  %v1671_v59 = vld [vmem:[%s2225_s12 + $0x40] ss:$16 sps:$4 sm:$0xff]  }
  0xb5   : > { %604 = vmatprep.subr.bf16.mxu0 %v1601_v11  ;;  %v1672_v60 = vld [vmem:[%s2225_s12 + $0x24] ss:$16 sps:$4 sm:$0xff]   ;;  %v1676_v61 = vld [vmem:[%s2225_s12 + $0x2c] ss:$16 sps:$4 sm:$0xff]   ;;  %v1674_v62 = vld [vmem:[%s2225_s12 + $0x28] ss:$16 sps:$4 sm:$0xff]  }
  0xb6   : > { %v1677_v63 = vld [vmem:[%s2225_s12 + $0x20] ss:$16 sps:$4 sm:$0xff]   ;;  %v1678_v0 = vld [vmem:[%s2225_s12 + $0x4] ss:$16 sps:$4 sm:$0xff]   ;;  %v1682_v1 = vld [vmem:[%s2225_s12 + $0xc] ss:$16 sps:$4 sm:$0xff]  }
  0xb7   : > { %1120 = vmatpush1.bf16.msra.mxu1 %v1653_v47  ;;  %v1680_v2 = vld [vmem:[%s2225_s12 + $0x8] ss:$16 sps:$4 sm:$0xff]   ;;  %v1683_v3 = vld [vmem:[%s2225_s12] ss:$16 sps:$4 sm:$0xff]   ;;  %v1684_v4 = vld [vmem:[%s2225_s12 + $0x1e4] ss:$16 sps:$4 sm:$0xff]  }
  0xb8   : > { %605 = vmatpush1.bf16.msra.mxu0 %v1603_v12  ;;  %1121 = vmatprep.subr.bf16.mxu1 %v1654_v48  ;;  %v1688_v5 = vld [vmem:[%s2225_s12 + $0x1ec] ss:$16 sps:$4 sm:$0xff]   ;;  %v1686_v6 = vld [vmem:[%s2225_s12 + $0x1e8] ss:$16 sps:$4 sm:$0xff]   ;;  %v1689_v7 = vld [vmem:[%s2225_s12 + $0x1e0] ss:$16 sps:$4 sm:$0xff]  }
  0xb9   : > { %606 = vmatprep.subr.bf16.mxu0 %v1604_v13  ;;  %v1690_v8 = vld [vmem:[%s2225_s12 + $0x1c4] ss:$16 sps:$4 sm:$0xff]   ;;  %v1694_v9 = vld [vmem:[%s2225_s12 + $0x1cc] ss:$16 sps:$4 sm:$0xff]   ;;  %v1692_v10 = vld [vmem:[%s2225_s12 + $0x1c8] ss:$16 sps:$4 sm:$0xff]  }
  0xba   : > { %v1695_v11 = vld [vmem:[%s2225_s12 + $0x1c0] ss:$16 sps:$4 sm:$0xff]   ;;  %v1696_v12 = vld [vmem:[%s2225_s12 + $0x1a4] ss:$16 sps:$4 sm:$0xff]   ;;  %v1700_v13 = vld [vmem:[%s2225_s12 + $0x1ac] ss:$16 sps:$4 sm:$0xff]  }
  0xbb   : > { %1122 = vmatpush1.bf16.msra.mxu1 %v1659_v51  ;;  %v1701_v15 = vld [vmem:[%s2225_s12 + $0x1a0] ss:$16 sps:$4 sm:$0xff]   ;;  %v1706_v17 = vld [vmem:[%s2225_s12 + $0x18c] ss:$16 sps:$4 sm:$0xff]  }
  0xbc   : > { %607 = vmatpush1.bf16.msra.mxu0 %v1606_v14  ;;  %1123 = vmatprep.subr.bf16.mxu1 %v1660_v52  ;;  %v1698_v14 = vld [vmem:[%s2225_s12 + $0x1a8] ss:$16 sps:$4 sm:$0xff]  }
  0xbd   : > { %608 = vmatprep.subr.bf16.mxu0 %v1607_v16  ;;  %v1702_v16 = vld [vmem:[%s2225_s12 + $0x184] ss:$16 sps:$4 sm:$0xff]  }
  0xbf   : > { %1124 = vmatpush1.bf16.msra.mxu1 %v1665_v55 }
  0xc0   : > { %609 = vmatpush1.bf16.msra.mxu0 %v1609_v18  ;;  %1125 = vmatprep.subr.bf16.mxu1 %v1666_v56  ;;  %v1704_v18 = vld [vmem:[%s2225_s12 + $0x188] ss:$16 sps:$4 sm:$0xff]  }
  0xc1   : > { %610 = vmatprep.subr.bf16.mxu0 %v1610_v19  ;;  %v1707_v19 = vld [vmem:[%s2225_s12 + $0x180] ss:$16 sps:$4 sm:$0xff]  }
  0xc3   : > { %1126 = vmatpush1.bf16.msra.mxu1 %v1671_v59 }
  0xc4   : > { %611 = vmatpush2.bf16.msra.mxu0 %v1612_v20  ;;  %1127 = vmatprep.subr.bf16.mxu1 %v1672_v60  ;;  %v1708_v20 = vld [vmem:[%s2225_s12 + $0x164] ss:$16 sps:$4 sm:$0xff]  }
  0xc5   : > { %612 = vmatprep.subr.bf16.mxu0 %v1613_v21  ;;  %v1712_v21 = vld [vmem:[%s2225_s12 + $0x16c] ss:$16 sps:$4 sm:$0xff]  }
  0xc7   : > { %1128 = vmatpush1.bf16.msra.mxu1 %v1677_v63 }
  0xc8   : > { %613 = vmatpush2.bf16.msra.mxu0 %v1615_v22  ;;  %1129 = vmatprep.subr.bf16.mxu1 %v1678_v0  ;;  %v1710_v22 = vld [vmem:[%s2225_s12 + $0x168] ss:$16 sps:$4 sm:$0xff]  }
  0xc9   : > { %614 = vmatprep.subr.bf16.mxu0 %v1616_v23  ;;  %v1713_v23 = vld [vmem:[%s2225_s12 + $0x160] ss:$16 sps:$4 sm:$0xff]  }
  0xcb   : > { %1130 = vmatpush1.bf16.msra.mxu1 %v1683_v3 }
  0xcc   : > { %615 = vmatpush2.bf16.msra.mxu0 %v1618_v24  ;;  %1131 = vmatprep.subr.bf16.mxu1 %v1684_v4  ;;  %v1714_v24 = vld [vmem:[%s2225_s12 + $0x144] ss:$16 sps:$4 sm:$0xff]  }
  0xcd   : > { %616 = vmatprep.subr.bf16.mxu0 %v1619_v25  ;;  %v1718_v25 = vld [vmem:[%s2225_s12 + $0x14c] ss:$16 sps:$4 sm:$0xff]  }
  0xcf   : > { %1132 = vmatpush2.bf16.msra.mxu1 %v1689_v7 }
  0xd0   : > { %617 = vmatpush2.bf16.msra.mxu0 %v1621_v26  ;;  %1133 = vmatprep.subr.bf16.mxu1 %v1690_v8  ;;  %v1716_v26 = vld [vmem:[%s2225_s12 + $0x148] ss:$16 sps:$4 sm:$0xff]  }
  0xd1   : > { %618 = vmatprep.subr.bf16.mxu0 %v1622_v27  ;;  %v1719_v27 = vld [vmem:[%s2225_s12 + $0x140] ss:$16 sps:$4 sm:$0xff]  }
  0xd3   : > { %1134 = vmatpush2.bf16.msra.mxu1 %v1695_v11 }
  0xd4   : > { %619 = vmatpush2.bf16.msra.mxu0 %v1624_v28  ;;  %1135 = vmatprep.subr.bf16.mxu1 %v1696_v12  ;;  %v1720_v28 = vld [vmem:[%s2225_s12 + $0x124] ss:$16 sps:$4 sm:$0xff]   ;;  %v679_v12 = vlaneseq }
  0xd5   : > { %620 = vmatprep.subr.bf16.mxu0 %v1625_v29  ;;  %v1722_v29 = vld [vmem:[%s2225_s12 + $0x128] ss:$16 sps:$4 sm:$0xff]  }
  0xd7   : > { %1136 = vmatpush2.bf16.msra.mxu1 %v1701_v15 }
  0xd8   : > { %621 = vmatpush2.bf16.msra.mxu0 %v1627_v30  ;;  %1137 = vmatprep.subr.bf16.mxu1 %v1702_v16  ;;  %v1724_v30 = vld [vmem:[%s2225_s12 + $0x12c] ss:$16 sps:$4 sm:$0xff]  }
  0xd9   : > { %622 = vmatprep.subr.bf16.mxu0 %v1628_v31  ;;  %v1725_v31 = vld [vmem:[%s2225_s12 + $0x120] ss:$16 sps:$4 sm:$0xff]  }
  0xdb   : > { %1138 = vmatpush2.bf16.msra.mxu1 %v1707_v19 }
  0xdc   : > { %623 = vmatpush2.bf16.msra.mxu0 %v1630_v32  ;;  %1139 = vmatprep.subr.bf16.mxu1 %v1708_v20  ;;  %v1726_v32 = vld [vmem:[%s2225_s12 + $0x104] ss:$16 sps:$4 sm:$0xff]   ;;  %v668_v20 = vld [vmem:[%s2217_s11] sm:$0x3] }
  0xdd   : > { %624 = vmatprep.subr.bf16.mxu0 %v1631_v33  ;;  %v1730_v33 = vld [vmem:[%s2225_s12 + $0x10c] ss:$16 sps:$4 sm:$0xff]  }
  0xdf   : > { %1140 = vmatpush2.bf16.msra.mxu1 %v1713_v23 }
  0xe0   : > { %625 = vmatpush2.bf16.msra.mxu0 %v1633_v34  ;;  %1141 = vmatprep.subr.bf16.mxu1 %v1714_v24  ;;  %v1728_v34 = vld [vmem:[%s2225_s12 + $0x108] ss:$16 sps:$4 sm:$0xff]   ;;  %v705_v24 = vld [vmem:[%s2219_s7] sm:$0x3] }
  0xe1   : > { %1156 = vmatprep.subr.bf16.mxu0 %v1640_v37 }
  0xe3   : > { %627 = vmatmul.mubr.bf16.vlgmr.msra.gmra.mxu0 %v1399_v35  ;;  %1142 = vmatpush2.bf16.msra.mxu1 %v1719_v27  ;;  %v1731_v35 = vld [vmem:[%s2225_s12 + $0x100] ss:$16 sps:$4 sm:$0xff]  }
  0xe4   : > { %1157 = vmatpush1.bf16.msra.mxu0 %v1638_v38  ;;  %1143 = vmatprep.subr.bf16.mxu1 %v1720_v28 }
  0xe5   : > { %1158 = vmatprep.subr.bf16.mxu0 %v1646_v41 }
  0xe7   : > { %1144 = vmatpush2.bf16.msra.mxu1 %v1725_v31 }
  0xe8   : > { %1159 = vmatpush1.bf16.msra.mxu0 %v1644_v42  ;;  %1145 = vmatprep.subr.bf16.mxu1 %v1726_v32 }
  0xe9   : > { %1160 = vmatprep.subr.bf16.mxu0 %v1652_v45 }
  0xeb   : > { %1146 = vmatpush2.bf16.msra.mxu1 %v1731_v35 }
  0xec   : > { %1161 = vmatpush1.bf16.msra.mxu0 %v1650_v46 }
  0xed   : > { %1162 = vmatprep.subr.bf16.mxu0 %v1658_v49 }
  0xf0   : > { %1163 = vmatpush1.bf16.msra.mxu0 %v1656_v50 }
  0xf1   : > { %1164 = vmatprep.subr.bf16.mxu0 %v1664_v53 }
  0xf4   : > { %1165 = vmatpush1.bf16.msra.mxu0 %v1662_v54 }
  0xf5   : > { %1166 = vmatprep.subr.bf16.mxu0 %v1670_v57 }
  0xf8   : > { %1167 = vmatpush1.bf16.msra.mxu0 %v1668_v58 }
  0xf9   : > { %1168 = vmatprep.subr.bf16.mxu0 %v1676_v61 }
  0xfc   : > { %1169 = vmatpush1.bf16.msra.mxu0 %v1674_v62 }
  0xfd   : > { %1170 = vmatprep.subr.bf16.mxu0 %v1682_v1 }
 0x100   : > { %1171 = vmatpush1.bf16.msra.mxu0 %v1680_v2 }
 0x101   : > { %1172 = vmatprep.subr.bf16.mxu0 %v1688_v5 }
 0x104   : > { %1173 = vmatpush2.bf16.msra.mxu0 %v1686_v6 }
 0x105   : > { %1174 = vmatprep.subr.bf16.mxu0 %v1694_v9 }
 0x108   : > { %1175 = vmatpush2.bf16.msra.mxu0 %v1692_v10  ;;  %v1957_v10 = vmov 1966171168  }
 0x109   : > { %1176 = vmatprep.subr.bf16.mxu0 %v1700_v13  ;;  %v677_v11 = vunpack.c.l.s4 %v1957_v10 }
 0x10b   : > { %v678_v13 = vunpack.c.0.s8 %v677_v11 }
 0x10c   : > { %1177 = vmatpush2.bf16.msra.mxu0 %v1698_v14  ;;  %v2325_v14 = vshrl.u32 %v679_v12, 7 }
 0x10d   : > { %1178 = vmatprep.subr.bf16.mxu0 %v1706_v17 }
 0x10e   : > { %v681_v16 = vsub.s32 %v678_v13, %v2325_v14  ;;  %v699_v23 = vsub.s32 1, %v2325_v14 }
 0x110   : > { %1179 = vmatpush2.bf16.msra.mxu0 %v1704_v18 }
 0x111   : > { %1180 = vmatprep.subr.bf16.mxu0 %v1712_v21 }
 0x114   : > { %1181 = vmatpush2.bf16.msra.mxu0 %v1710_v22  ;;  %v695_v22 = vsub.s32 0, %v2325_v14 }
 0x115   : > { %1182 = vmatprep.subr.bf16.mxu0 %v1718_v25 }
 0x116   : > { %v710_v28 = vrot.slane %v705_v24, %v695_v22 }
 0x118   : > { %1183 = vmatpush2.bf16.msra.mxu0 %v1716_v26 }
 0x119   : > { %1184 = vmatprep.subr.bf16.mxu0 %v1724_v30 }
 0x11c   : > { %1185 = vmatpush2.bf16.msra.mxu0 %v1722_v29  ;;  %v714_v29 = vrot.slane %v705_v24, %v699_v23 }
 0x11d   : > { %1186 = vmatprep.subr.bf16.mxu0 %v1730_v33 }
 0x120   : > { %1187 = vmatpush2.bf16.msra.mxu0 %v1728_v34 }
 0x1a3   : > { %v628_v36 = vpop.f32.mrf.mxu0 }
 0x1a4   : > { %v635_v37 = vrot.slane %v628_v36, 4 }
 0x1a5   : > { %v630_v38 = vpop.f32.mrf.mxu0 }
 0x1a6   : > { %v636_v39 = vadd.f32 %v635_v37, %v628_v36  ;;  %v641_v40 = vrot.slane %v630_v38, 4 }
 0x1a7   : > { %v632_v41 = vpop.f32.mrf.mxu0 }
 0x1a8   : > { %v637_v42 = vrot.slane %v636_v39, 2  ;;  %v642_v43 = vadd.f32 %v641_v40, %v630_v38  ;;  %v725_v40 = vld [vmem:[#allocation2 + $0x10] sm:$0xff]  ;;  %v727_v41 = vld [vmem:[#allocation2 + $0x18] sm:$0xff] }
 0x1a9   : > { %v633_v44 = vpop.f32.mrf.mxu0 }
 0x1aa   : > { %v638_v45 = vadd.f32 %v637_v42, %v636_v39  ;;  %v643_v46 = vrot.slane %v642_v43, 2  ;;  %v726_v44 = vld [vmem:[#allocation2] sm:$0xff] }
 0x1ac   : > { %v639_v47 = vrot.slane %v638_v45, 1  ;;  %v644_v48 = vadd.f32 %v643_v46, %v642_v43 }
 0x1ae   : > { %v640_v49 = vadd.f32 %v639_v47, %v638_v45  ;;  %v645_v50 = vrot.slane %v644_v48, 1  ;;  %v728_v45 = vld [vmem:[#allocation2 + $0x8] sm:$0xff] }
 0x1b0   : > { %v648_v51 = vmul.f32 0.125, %v640_v49  ;;  %v646_v52 = vadd.f32 %v645_v50, %v644_v48 }
 0x1b2   : > { %v650_v53 = vsub.f32 %v628_v36, %v648_v51  ;;  %v649_v54 = vmul.f32 0.125, %v646_v52 }
 0x1b4   : > { %v652_v55 = vmul.f32 %v650_v53, %v650_v53  ;;  %v651_v56 = vsub.f32 %v630_v38, %v649_v54 }
 0x1b6   : > { %v654_v57 = vrot.slane %v652_v55, 4  ;;  %v653_v58 = vmul.f32 %v651_v56, %v651_v56 }
 0x1b8   : > { %v655_v59 = vadd.f32 %v654_v57, %v652_v55  ;;  %v660_v60 = vrot.slane %v653_v58, 4 }
 0x1ba   : > { %v656_v61 = vrot.slane %v655_v59, 2  ;;  %v661_v62 = vadd.f32 %v660_v60, %v653_v58 }
 0x1bc   : > { %v657_v63 = vadd.f32 %v656_v61, %v655_v59  ;;  %v662_v0 = vrot.slane %v661_v62, 2 }
 0x1be   : > { %v658_v1 = vrot.slane %v657_v63, 1  ;;  %v663_v2 = vadd.f32 %v662_v0, %v661_v62 }
 0x1c0   : > { %v659_v3 = vadd.f32 %v658_v1, %v657_v63  ;;  %v664_v4 = vrot.slane %v663_v2, 1 }
 0x1c2   : > { %v666_v5 = vmul.f32 0.125, %v659_v3  ;;  %v665_v6 = vadd.f32 %v664_v4, %v663_v2 }
 0x1c4   : > { %v669_v7 = vadd.f32 1e-05, %v666_v5  ;;  %v667_v8 = vmul.f32 0.125, %v665_v6 }
 0x1c6   : > { %v670_v9 = vadd.f32 1e-05, %v667_v8  ;;  %1732 = vrsqrt.f32 %v669_v7 }
 0x1c8   : > { %1734 = vrsqrt.f32 %v670_v9 }
 0x1d3   : > { %v1733_v15 = vpop.eup %1732 }
 0x1d5   : > { %v1735_v17 = vpop.eup %1734 }
 0x1d6   : > { %v675_v18 = vcombine.low %v1733_v15, %v1735_v17 }
 0x1d8   : > { %v682_v19 = vrot.slane %v675_v18, %v681_v16 }
 0x1da   : > { %v689_v21 = vrot.slane %v682_v19, %v681_v16 }
 0x1dc   : > { %v691_v25 = vmul.f32 %v689_v21, %v668_v20 }
 0x1de   : > { %v696_v26 = vrot.slane %v691_v25, %v695_v22  ;;  %v700_v27 = vrot.slane %v691_v25, %v699_v23 }
 0x1e0   : > { %v704_v30 = vmul.f32 %v700_v27, %v651_v56  ;;  %v703_v31 = vmul.f32 %v696_v26, %v650_v53 }
 0x1e2   : > { %v718_v32 = vadd.f32 %v714_v29, %v704_v30  ;;  %v717_v33 = vadd.f32 %v710_v28, %v703_v31 }
 0x1e4   : > { %vm720_vm0 = vcmp.gt.f32.partialorder %v718_v32, 0.0  ;;  %v722_v34 = vmul.f32 0.1, %v718_v32  ;;  %vm719_vm1 = vcmp.gt.f32.partialorder %v717_v33, 0.0  ;;  %v721_v35 = vmul.f32 0.1, %v717_v33 }
 0x1e6   : > { %v724_v36 = vsel %vm720_vm0, %v718_v32, %v722_v34  ;;  %v723_v37 = vsel %vm719_vm1, %v717_v33, %v721_v35 }
 0x1e7   : > { %v730_v38 = vpack.c.bf16 %v724_v36, %v724_v36  ;;  %v729_v39 = vpack.c.bf16 %v723_v37, %v723_v37 }
 0x1e9   : > { %1147 = vmatprep.mubr.bf16.mxu1 %v730_v38  ;;  %1188 = vmatprep.mubr.bf16.mxu0 %v730_v38 }
 0x1ea   : > { %1148 = vmatmul.mubr.bf16.vlgmr.msra.gmra.mxu1 %v729_v39  ;;  %1189 = vmatmul.mubr.bf16.vlgmr.msra.gmra.mxu0 %v729_v39 }
 0x2aa   : > { %v1149_v42 = vpop.f32.mrf.mxu1  ;;  %v1190_v43 = vpop.f32.mrf.mxu0 }
 0x2ab   : > { %v1197_v46 = vadd.f32 %v1149_v42, %v725_v40  ;;  %v1199_v47 = vadd.f32 %v1190_v43, %v727_v41 }
 0x2ac   : > { %v1151_v48 = vpop.f32.mrf.mxu1  ;;  %v1192_v49 = vpop.f32.mrf.mxu0  ;;  %1208 = sbr.rel (%p1497_p3) target bundleno = 698 (0x2ba), region = 72 }
 0x2ad   : > { %1201 = vst [vmem:[#allocation2 + $0x10] sm:$0xff] %v1197_v46  ;;  %1203 = vst [vmem:[#allocation2 + $0x18] sm:$0xff] %v1199_v47  ;;  %v1198_v50 = vadd.f32 %v1151_v48, %v726_v44  ;;  %v1200_v51 = vadd.f32 %v1192_v49, %v728_v45 }
 0x2ae   : > { %v1153_v52 = vpop.f32.mrf.mxu1  ;;  %v1194_v53 = vpop.f32.mrf.mxu0 }
 0x2af   : > { %1202 = vst [vmem:[#allocation2] sm:$0xff] %v1198_v50  ;;  %1204 = vst [vmem:[#allocation2 + $0x8] sm:$0xff] %v1200_v51 }
 0x2b0   : > { %v1154_v54 = vpop.f32.mrf.mxu1  ;;  %v1195_v55 = vpop.f32.mrf.mxu0 }
 0x2b1   : > { %v1213_v57 = vld [vmem:[%s2368_s5] sm:$0xf]  ;;  %v1225_v59 = vsub.s32 2, %v2325_v14  ;;  %v1229_v60 = vsub.s32 3, %v2325_v14 }
 0x2b2   : > { %v1218_v61 = vrot.slane %v1213_v57, %v695_v22  ;;  %v1222_v62 = vrot.slane %v1213_v57, %v699_v23 }
 0x2b3   : > { %v1226_v1 = vrot.slane %v1213_v57, %v1225_v59  ;;  %v1230_v2 = vrot.slane %v1213_v57, %v1229_v60 }
 0x2b4   : > { %v1209_v56 = vld [vmem:[#allocation2 + $0x10] sm:$0xff]  ;;  %v1211_v63 = vld [vmem:[#allocation2 + $0x18] sm:$0xff] }
 0x2b5   : > { %v1235_v3 = vadd.f32 %v1218_v61, %v1209_v56  ;;  %v1237_v5 = vadd.f32 %v1226_v1, %v1211_v63 }
 0x2b6   : > { %v1210_v58 = vld [vmem:[#allocation2] sm:$0xff]  ;;  %v1212_v0 = vld [vmem:[#allocation2 + $0x8] sm:$0xff] }
 0x2b7   : > { %v1236_v4 = vadd.f32 %v1222_v62, %v1210_v58  ;;  %v1238_v6 = vadd.f32 %v1230_v2, %v1212_v0  ;;  %1239 = vst [vmem:[#allocation12] sm:$0xff] %v1235_v3  ;;  %1241 = vst [vmem:[#allocation12 + $0x10] sm:$0xff] %v1237_v5 }
 0x2b9   : > { %1240 = vst [vmem:[#allocation12 + $0x8] sm:$0xff] %v1236_v4  ;;  %1242 = vst [vmem:[#allocation12 + $0x18] sm:$0xff] %v1238_v6 }
 0x2ba PF: > { %p1543_p11 = scmp.eq.s32.totalorder %s2111_s10, 3  ;;  %s1958_s20 = smov [#allocation12]  }
 0x2bb   : > { %s1250_s27 = sshll.u32 %s1958_s20, 4  ;;  %s1251_s27 = int_to_ptr.vmem [resolvable:$true] %s1250_s27 }
 0x2bc   : > { %s1874_s17 = scalar_lea.vmem %s1251_s27, 512  ;;  %p1881_p6 = scmp.lt.s32.totalorder %s1251_s27, %s1251_s27 }
 0x2bd   : > { %p1875_p10 = scmp.ne.s32.totalorder %s1251_s27, %s1874_s17  ;;  %p1882_p8 = scmp.lt.s32.totalorder %s1874_s17, %s1874_s17 }
 0x2bf   : > { %p1876_p13 = pnand %p1875_p10, %p1543_p11  ;;  %p1883_p1 = por %p1882_p8, %p1881_p6 }
 0x2c1   : > { %p1877_p0 = pneg %p1876_p13 }
 0x2c3   : > { %p1884_p9 = pnand %p1883_p1, %p1877_p0 }
 0x2c5   : > { %1887 = shalt.err (!%p1884_p9)
}
 0x2c6   : > { %1520 = dma.vmem_to_hbm [thread:$0]  (%p1543_p11), %s1251_s27, 512, %s2369_s6, [#allocation5]  }
 0x2c7   : > { %1927 = dma.done.wait (%p1543_p11), [#allocation5], 512  }
 0x2c8   : > { %1929 = vsyncadd (%p1543_p11), [#allocation5], 4294966784 }
 0x2c9 PF: > { %s2392_s28 = sld [smem:[#allocation17_spill]]  ;;  %p21_p7 = scmp.ge.s32.totalorder %s2015_s25, 6  }
 0x2ca   : > { %s2393_s21 = smov %s1936_s22  ;;  %s2394_s22 = smov %s1940_s23 }
 0x2cb   : > { %s2396_s24 = smov %s2015_s25  ;;  %23 = sbr.rel (!%p21_p7) target bundleno = 9 (0x9), region = 129 }
 0x2cf   : > { %s2395_s23 = smov %s2392_s28 }
 0x2d0   :  { %1263 = vsyncpa [#allocation4], 1 }
 0x2d1   :  { %1265 = vsyncpa [#allocation4 + $0x1], 1 }
 0x2d2   :  { %1266 = vsyncpa [#allocation7], 1 }
 0x2d3   :  { %1268 = vsyncpa [#allocation7 + $0x1], 1 }
 0x2d4   :  { %1269 = vsyncpa [#allocation10], 1 }
 0x2d5   :  { %1271 = vsyncpa [#allocation10 + $0x1], 1 }
 0x2d6   :  { %1272 = vsyncpa [#allocation5], 1 }
 0x2d7   :  { %1274 = vsyncpa [#allocation5 + $0x1], 1 }

</bundles_post_ra>
